<compile_context>
chip_gen: v7x
topology: tpu7x:2x2x1
jax: 0.10.0
libtpu: 0.0.40
codegen_flags: <defaults>
</compile_context>

<pallas_src>
import jax
import jax.numpy as jnp
from jax.experimental import pallas as pl
from jax.experimental.pallas import tpu as pltpu


def _make_mlp_kernel(num_classes):
    """Fused 4-layer MLP on one batch tile.  All weights resident in VMEM."""

    def kernel(x_ref, w1_ref, b1_ref, w2_ref, b2_ref,
               w3_ref, b3_ref, w4_ref, b4_ref, o_ref):
        # Layer 1: single lane-packed dot, bf16 operands, f32 accumulation.
        h = jnp.dot(x_ref[...], w1_ref[...], preferred_element_type=jnp.float32)
        h = jnp.maximum(h + b1_ref[...], 0.0)            # bias + ReLU in f32

        # dropout layers are identity at inference
        h = jnp.dot(h.astype(jnp.bfloat16), w2_ref[...],
                    preferred_element_type=jnp.float32)
        h = jnp.maximum(h + b2_ref[...], 0.0)

        h = jnp.dot(h.astype(jnp.bfloat16), w3_ref[...],
                    preferred_element_type=jnp.float32)
        h = jnp.maximum(h + b3_ref[...], 0.0)

        z = jnp.dot(h.astype(jnp.bfloat16), w4_ref[...],
                    preferred_element_type=jnp.float32) + b4_ref[...]
        # Store only the real classes (narrow masked vst beats a 128-wide f32 slab).
        o_ref[...] = z[:, :num_classes].astype(o_ref.dtype)

    return kernel


def _round_up(n, m):
    return ((n + m - 1) // m) * m


def _pad2(a, rows, cols):
    r, c = a.shape
    return jnp.pad(a, ((0, rows - r), (0, cols - c)))


def _pick_batch_tile(B, tile_max):
    """Balanced batch tile: multiple of 16, >=2 tiles for moderate B (v7x)."""
    b16 = _round_up(B, 16)
    n_tiles = -(-b16 // tile_max)
    if n_tiles == 1 and b16 >= 256:
        n_tiles = 2                                   # feed both v7x TensorCores
    tile = max(16, _round_up(-(-B // n_tiles), 16))
    n_tiles = -(-B // tile)
    return tile, n_tiles


def contr_final_2_forward(f_view_l, params, num_view_1, num_view_2, final_model,
                          *, tile_b=512):
    """Forward pass: concat is done in the wrapper; the whole MLP runs in one kernel."""
    fv1 = list(f_view_l[0:num_view_1])
    fv2 = list(f_view_l[3:3 + num_view_2])
    views = fv1 + fv2 + ([f_view_l[-1]] if final_model else [])

    (w1, b1), (w2, b2), (w3, b3), (w4, b4) = params
    B = views[0].shape[0]
    in_dim = sum(v.shape[1] for v in views)
    h2, h3, h4 = w1.shape[1], w2.shape[1], w3.shape[1]
    num_classes = w4.shape[1]

    # Pad hidden dims to 128 so every dot is N=128 lane-dense and every
    # bias-add / ReLU is a full-vreg op.  Zero padding propagates zeros.
    h2p = _round_up(max(h2, 128), 128)
    h3p = _round_up(max(h3, 128), 128)
    h4p = _round_up(max(h4, 128), 128)
    out_pad = _round_up(max(num_classes, 128), 128)   # MXU lanes only; not stored

    w1p = _pad2(w1, in_dim, h2p).astype(jnp.bfloat16)
    w2p = _pad2(w2, h2p, h3p).astype(jnp.bfloat16)
    w3p = _pad2(w3, h3p, h4p).astype(jnp.bfloat16)
    w4p = _pad2(w4, h4p, out_pad).astype(jnp.bfloat16)
    b1p = _pad2(b1, 1, h2p)
    b2p = _pad2(b2, 1, h3p)
    b3p = _pad2(b3, 1, h4p)
    b4p = _pad2(b4, 1, out_pad)

    # Pre-concatenate views and cast activations to bf16 (halves input HBM bytes).
    x = jnp.concatenate(views, axis=1).astype(jnp.bfloat16)

    # Balanced, 16-aligned batch tiling; pad batch with zero rows.
    tile_b, n_tiles = _pick_batch_tile(B, tile_b)
    b_pad = n_tiles * tile_b
    if b_pad != B:
        x = jnp.pad(x, ((0, b_pad - B), (0, 0)))

    def _full(shape):   # weights / biases: whole array, resident across the grid
        return pl.BlockSpec(shape, lambda i: (0, 0))

    flops = int(2 * b_pad * (in_dim * h2p + h2p * h3p + h3p * h4p + h4p * out_pad))
    bytes_accessed = int(
        b_pad * in_dim * 2                                         # bf16 activations
        + 2 * (in_dim * h2p + h2p * h3p + h3p * h4p + h4p * out_pad)  # bf16 weights
        + 4 * (h2p + h3p + h4p + out_pad)                          # f32 biases
        + b_pad * num_classes * 4)                                 # f32 output (narrow)

    out = pl.pallas_call(
        _make_mlp_kernel(num_classes),
        out_shape=jax.ShapeDtypeStruct((b_pad, num_classes), jnp.float32),
        grid=(n_tiles,),
        in_specs=[
            pl.BlockSpec((tile_b, in_dim), lambda i: (i, 0)),
            _full((in_dim, h2p)), _full((1, h2p)),
            _full((h2p, h3p)),    _full((1, h3p)),
            _full((h3p, h4p)),    _full((1, h4p)),
            _full((h4p, out_pad)), _full((1, out_pad)),
        ],
        out_specs=pl.BlockSpec((tile_b, num_classes), lambda i: (i, 0)),
        compiler_params=pltpu.CompilerParams(
            dimension_semantics=("parallel",),          # batch tiles across TCs (v7x)
            vmem_limit_bytes=32 * 1024 * 1024),         # safe on v5e/v6e/v7x
        cost_estimate=pl.CostEstimate(flops=flops, transcendentals=0,
                                      bytes_accessed=bytes_accessed),
    )(x, w1p, b1p, w2p, b2p, w3p, b3p, w4p, b4p)

    return out[:B] if b_pad != B else out


def make_params(key, in_dim, hidden, num_classes):
    """Deterministic synthetic parameters.

    Weights are stored [in, out] (pre-transposed vs. PyTorch's [out, in]);
    biases are [1, out] for clean broadcasting on TPU.
    """
    dims = [(in_dim, hidden * 2),
            (hidden * 2, hidden),
            (hidden, hidden // 2),
            (hidden // 2, num_classes)]
    params = []
    for i, (din, dout) in enumerate(dims):
        kw, kb = jax.random.split(jax.random.fold_in(key, i))
        scale = 1.0 / jnp.sqrt(jnp.float32(din))
        w = jax.random.uniform(kw, (din, dout), jnp.float32, -scale, scale)
        b = jax.random.uniform(kb, (1, dout), jnp.float32, -scale, scale)
        params.append((w, b))
    return params


def _reference(views, params):
    """Pure-JAX reference with the same bf16-operand / f32-accumulate math."""
    (w1, b1), (w2, b2), (w3, b3), (w4, b4) = params

    def lin(x, w, b):
        return jnp.dot(x.astype(jnp.bfloat16), w.astype(jnp.bfloat16),
                       preferred_element_type=jnp.float32) + b

    y = jnp.concatenate(views, axis=1)
    h = jnp.maximum(lin(y, w1, b1), 0.0)
    h = jnp.maximum(lin(h, w2, b2), 0.0)
    h = jnp.maximum(lin(h, w3, b3), 0.0)
    return lin(h, w4, b4)


if __name__ == "__main__":
    # Small configuration consistent with the module's constructor.
    hp = {"gnn_hidden_dim": 32, "num_classes": 4, "contr_final_dropout": 0.1}
    num_view_1, num_view_2, final_model = 2, 2, True
    B, H = 8, hp["gnn_hidden_dim"]

    key = jax.random.PRNGKey(0)
    # f_view_l: per-view feature tensors, each [B, H].  Need at least
    # 3 + num_view_2 entries plus the trailing "final model" entry.
    n_views_total = 3 + num_view_2 + 1
    view_keys = jax.random.split(jax.random.fold_in(key, 100), n_views_total)
    f_view_l = [jax.random.normal(k, (B, H), jnp.float32) for k in view_keys]

    in_dim = (num_view_1 + num_view_2 + int(final_model)) * H
    params = make_params(jax.random.fold_in(key, 200), in_dim, H, hp["num_classes"])

    z = contr_final_2_forward(f_view_l, params, num_view_1, num_view_2, final_model)
    jax.block_until_ready(z)
    assert z.shape == (B, hp["num_classes"])

    # Reference check (same bf16/f32 math, dropout = identity at inference).
    fv1 = f_view_l[0:num_view_1]
    fv2 = f_view_l[3:3 + num_view_2]
    views = list(fv1) + list(fv2) + [f_view_l[-1]]
    z_ref = _reference(views, params)
    assert jnp.allclose(z, z_ref, atol=1e-3, rtol=1e-3), (
        float(jnp.max(jnp.abs(z - z_ref))))

    print("KERNEL_OK")
</pallas_src>

<mosaic_0001>
module attributes {stable_mosaic.version = 11 : i64} {
  func.func @kernel(%arg0: i32, %arg1: memref<16x160xbf16, #tpu.memory_space<vmem>>, %arg2: memref<160x128xbf16, #tpu.memory_space<vmem>>, %arg3: memref<1x128xf32, #tpu.memory_space<vmem>>, %arg4: memref<128x128xbf16, #tpu.memory_space<vmem>>, %arg5: memref<1x128xf32, #tpu.memory_space<vmem>>, %arg6: memref<128x128xbf16, #tpu.memory_space<vmem>>, %arg7: memref<1x128xf32, #tpu.memory_space<vmem>>, %arg8: memref<128x128xbf16, #tpu.memory_space<vmem>>, %arg9: memref<1x128xf32, #tpu.memory_space<vmem>>, %arg10: memref<16x4xf32, #tpu.memory_space<vmem>>) attributes {dimension_semantics = [#tpu.dimension_semantics<parallel>], iteration_bounds = array<i64: 1>, scalar_prefetch = 0 : i64, scratch_operands = 0 : i64, tpu.core_type = #tpu.core_type<tc>, window_params = [{transform_indices = @transform_0, window_bounds = array<i64: 16, 160>}, {pipeline_mode = #tpu.pipeline_mode<synchronous>, transform_indices = @transform_1, window_bounds = array<i64: 160, 128>}, {pipeline_mode = #tpu.pipeline_mode<synchronous>, transform_indices = @transform_2, window_bounds = array<i64: 1, 128>}, {pipeline_mode = #tpu.pipeline_mode<synchronous>, transform_indices = @transform_3, window_bounds = array<i64: 128, 128>}, {pipeline_mode = #tpu.pipeline_mode<synchronous>, transform_indices = @transform_4, window_bounds = array<i64: 1, 128>}, {pipeline_mode = #tpu.pipeline_mode<synchronous>, transform_indices = @transform_5, window_bounds = array<i64: 128, 128>}, {pipeline_mode = #tpu.pipeline_mode<synchronous>, transform_indices = @transform_6, window_bounds = array<i64: 1, 128>}, {pipeline_mode = #tpu.pipeline_mode<synchronous>, transform_indices = @transform_7, window_bounds = array<i64: 128, 128>}, {pipeline_mode = #tpu.pipeline_mode<synchronous>, transform_indices = @transform_8, window_bounds = array<i64: 1, 128>}, {transform_indices = @transform_9, window_bounds = array<i64: 16, 4>}]} {
    %c0 = arith.constant 0 : index
    %c0_0 = arith.constant 0 : index
    %0 = vector.load %arg1[%c0, %c0_0] : memref<16x160xbf16, #tpu.memory_space<vmem>>, vector<16x160xbf16>
    %c0_1 = arith.constant 0 : index
    %c0_2 = arith.constant 0 : index
    %1 = vector.load %arg2[%c0_1, %c0_2] : memref<160x128xbf16, #tpu.memory_space<vmem>>, vector<160x128xbf16>
    %cst = arith.constant dense<0.000000e+00> : vector<16x128xf32>
    %2 = tpu.matmul %0, %1, %cst {dimension_numbers = #tpu.dot_dimension_numbers<[1], [0], [0], [1], [0, 0, 1, 1], [], []>} : vector<16x160xbf16>, vector<160x128xbf16>, vector<16x128xf32> -> vector<16x128xf32>
    %c0_3 = arith.constant 0 : index
    %c0_4 = arith.constant 0 : index
    %3 = vector.load %arg3[%c0_3, %c0_4] : memref<1x128xf32, #tpu.memory_space<vmem>>, vector<1x128xf32>
    %4 = vector.broadcast %3 : vector<1x128xf32> to vector<16x128xf32>
    %5 = arith.addf %2, %4 : vector<16x128xf32>
    %cst_5 = arith.constant 0.000000e+00 : f32
    %6 = vector.broadcast %cst_5 : f32 to vector<16x128xf32>
    %7 = arith.maximumf %5, %6 : vector<16x128xf32>
    %8 = arith.truncf %7 : vector<16x128xf32> to vector<16x128xbf16>
    %c0_6 = arith.constant 0 : index
    %c0_7 = arith.constant 0 : index
    %9 = vector.load %arg4[%c0_6, %c0_7] : memref<128x128xbf16, #tpu.memory_space<vmem>>, vector<128x128xbf16>
    %cst_8 = arith.constant dense<0.000000e+00> : vector<16x128xf32>
    %10 = tpu.matmul %8, %9, %cst_8 {dimension_numbers = #tpu.dot_dimension_numbers<[1], [0], [0], [1], [0, 0, 1, 1], [], []>} : vector<16x128xbf16>, vector<128x128xbf16>, vector<16x128xf32> -> vector<16x128xf32>
    %c0_9 = arith.constant 0 : index
    %c0_10 = arith.constant 0 : index
    %11 = vector.load %arg5[%c0_9, %c0_10] : memref<1x128xf32, #tpu.memory_space<vmem>>, vector<1x128xf32>
    %12 = vector.broadcast %11 : vector<1x128xf32> to vector<16x128xf32>
    %13 = arith.addf %10, %12 : vector<16x128xf32>
    %cst_11 = arith.constant 0.000000e+00 : f32
    %14 = vector.broadcast %cst_11 : f32 to vector<16x128xf32>
    %15 = arith.maximumf %13, %14 : vector<16x128xf32>
    %16 = arith.truncf %15 : vector<16x128xf32> to vector<16x128xbf16>
    %c0_12 = arith.constant 0 : index
    %c0_13 = arith.constant 0 : index
    %17 = vector.load %arg6[%c0_12, %c0_13] : memref<128x128xbf16, #tpu.memory_space<vmem>>, vector<128x128xbf16>
    %cst_14 = arith.constant dense<0.000000e+00> : vector<16x128xf32>
    %18 = tpu.matmul %16, %17, %cst_14 {dimension_numbers = #tpu.dot_dimension_numbers<[1], [0], [0], [1], [0, 0, 1, 1], [], []>} : vector<16x128xbf16>, vector<128x128xbf16>, vector<16x128xf32> -> vector<16x128xf32>
    %c0_15 = arith.constant 0 : index
    %c0_16 = arith.constant 0 : index
    %19 = vector.load %arg7[%c0_15, %c0_16] : memref<1x128xf32, #tpu.memory_space<vmem>>, vector<1x128xf32>
    %20 = vector.broadcast %19 : vector<1x128xf32> to vector<16x128xf32>
    %21 = arith.addf %18, %20 : vector<16x128xf32>
    %cst_17 = arith.constant 0.000000e+00 : f32
    %22 = vector.broadcast %cst_17 : f32 to vector<16x128xf32>
    %23 = arith.maximumf %21, %22 : vector<16x128xf32>
    %24 = arith.truncf %23 : vector<16x128xf32> to vector<16x128xbf16>
    %c0_18 = arith.constant 0 : index
    %c0_19 = arith.constant 0 : index
    %25 = vector.load %arg8[%c0_18, %c0_19] : memref<128x128xbf16, #tpu.memory_space<vmem>>, vector<128x128xbf16>
    %cst_20 = arith.constant dense<0.000000e+00> : vector<16x128xf32>
    %26 = tpu.matmul %24, %25, %cst_20 {dimension_numbers = #tpu.dot_dimension_numbers<[1], [0], [0], [1], [0, 0, 1, 1], [], []>} : vector<16x128xbf16>, vector<128x128xbf16>, vector<16x128xf32> -> vector<16x128xf32>
    %c0_21 = arith.constant 0 : index
    %c0_22 = arith.constant 0 : index
    %27 = vector.load %arg9[%c0_21, %c0_22] : memref<1x128xf32, #tpu.memory_space<vmem>>, vector<1x128xf32>
    %28 = vector.broadcast %27 : vector<1x128xf32> to vector<16x128xf32>
    %29 = arith.addf %26, %28 : vector<16x128xf32>
    %30 = vector.extract_strided_slice %29 {offsets = [0, 0], sizes = [16, 4], strides = [1, 1]} : vector<16x128xf32> to vector<16x4xf32>
    %c0_23 = arith.constant 0 : index
    %c0_24 = arith.constant 0 : index
    %31 = vector.load %arg10[%c0_23, %c0_24] : memref<16x4xf32, #tpu.memory_space<vmem>>, vector<16x4xf32>
    tpu.vector_store %arg10[%c0_23, %c0_24], %30 {strides = array<i32>} : memref<16x4xf32, #tpu.memory_space<vmem>>, vector<16x4xf32>,
    return
  }
  func.func @transform_0(%arg0: i32) -> (i32, i32) {
    %c0_i32 = arith.constant 0 : i32
    %c0_i32_0 = arith.constant 0 : i32
    return %arg0, %c0_i32 : i32, i32
  }
  func.func @transform_1(%arg0: i32) -> (i32, i32) {
    %c0_i32 = arith.constant 0 : i32
    %c0_i32_0 = arith.constant 0 : i32
    %c0_i32_1 = arith.constant 0 : i32
    return %c0_i32, %c0_i32_0 : i32, i32
  }
  func.func @transform_2(%arg0: i32) -> (i32, i32) {
    %c0_i32 = arith.constant 0 : i32
    %c0_i32_0 = arith.constant 0 : i32
    %c0_i32_1 = arith.constant 0 : i32
    return %c0_i32, %c0_i32_0 : i32, i32
  }
  func.func @transform_3(%arg0: i32) -> (i32, i32) {
    %c0_i32 = arith.constant 0 : i32
    %c0_i32_0 = arith.constant 0 : i32
    %c0_i32_1 = arith.constant 0 : i32
    return %c0_i32, %c0_i32_0 : i32, i32
  }
  func.func @transform_4(%arg0: i32) -> (i32, i32) {
    %c0_i32 = arith.constant 0 : i32
    %c0_i32_0 = arith.constant 0 : i32
    %c0_i32_1 = arith.constant 0 : i32
    return %c0_i32, %c0_i32_0 : i32, i32
  }
  func.func @transform_5(%arg0: i32) -> (i32, i32) {
    %c0_i32 = arith.constant 0 : i32
    %c0_i32_0 = arith.constant 0 : i32
    %c0_i32_1 = arith.constant 0 : i32
    return %c0_i32, %c0_i32_0 : i32, i32
  }
  func.func @transform_6(%arg0: i32) -> (i32, i32) {
    %c0_i32 = arith.constant 0 : i32
    %c0_i32_0 = arith.constant 0 : i32
    %c0_i32_1 = arith.constant 0 : i32
    return %c0_i32, %c0_i32_0 : i32, i32
  }
  func.func @transform_7(%arg0: i32) -> (i32, i32) {
    %c0_i32 = arith.constant 0 : i32
    %c0_i32_0 = arith.constant 0 : i32
    %c0_i32_1 = arith.constant 0 : i32
    return %c0_i32, %c0_i32_0 : i32, i32
  }
  func.func @transform_8(%arg0: i32) -> (i32, i32) {
    %c0_i32 = arith.constant 0 : i32
    %c0_i32_0 = arith.constant 0 : i32
    %c0_i32_1 = arith.constant 0 : i32
    return %c0_i32, %c0_i32_0 : i32, i32
  }
  func.func @transform_9(%arg0: i32) -> (i32, i32) {
    %c0_i32 = arith.constant 0 : i32
    %c0_i32_0 = arith.constant 0 : i32
    return %arg0, %c0_i32 : i32, i32
  }
}

</mosaic_0001>

<bundles_post_ra>
// kernel: tpu_custom_call.1
= control target key start
LH: loop header
LB: loop body
LE: loop exit
PB: predicated region body
PF: predicated region fallthrough
CT: control target
= control target key end

     0   :  { %14 = vsyncpa [#allocation3], 0  ;;  %s1074_s0 = inlined_call_operand.hbm [shape: bf16[16,160], index: 0, kind: input, shape index: {}]   ;;  %s1075_s1 = inlined_call_operand.hbm [shape: bf16[160,128], index: 1, kind: input, shape index: {}]   ;;  %s1076_s2 = inlined_call_operand.vmem [shape: f32[1,128], index: 2, kind: input, shape index: {}]   ;;  %s1077_s3 = inlined_call_operand.hbm [shape: bf16[128,128], index: 3, kind: input, shape index: {}]   ;;  %s1078_s4 = inlined_call_operand.vmem [shape: f32[1,128], index: 4, kind: input, shape index: {}]   ;;  %s1079_s5 = inlined_call_operand.hbm [shape: bf16[128,128], index: 5, kind: input, shape index: {}]   ;;  %s1080_s6 = inlined_call_operand.vmem [shape: f32[1,128], index: 6, kind: input, shape index: {}]   ;;  %s1081_s7 = inlined_call_operand.hbm [shape: bf16[128,128], index: 7, kind: input, shape index: {}]   ;;  %s1082_s8 = inlined_call_operand.vmem [shape: f32[1,128], index: 8, kind: input, shape index: {}]   ;;  %s1083_s9 = inlined_call_operand.vmem [shape: f32[16,4], index: 9, kind: output, shape index: {}]  }
   0x1   :  { %15 = vsyncpa [#allocation5], 0 }
   0x2   :  { %16 = vsyncpa [#allocation8], 0  ;;  %s892_s30 = smov [#allocation4]   ;;  %s776_s13 = scalar_lea.hbm %s1075_s1, 1280 }
   0x3   :  { %s34_s10 = sshll.u32 %s892_s30, 4  ;;  %p777_p0 = scmp.ne.s32.totalorder %s1075_s1, %s776_s13  ;;  %s35_s10 = int_to_ptr.vmem [resolvable:$true] %s34_s10 }
   0x4   :  { %p780_p1 = scmp.lt.u32.totalorder %s776_s13, %s1075_s1 }
   0x6   :  { %p782_p2 = pnand %p780_p1, %p777_p0 }
   0x8   :  { %785 = shalt.err (!%p782_p2)
}
   0x9   :  { %s786_s18 = scalar_lea.vmem %s35_s10, 1280  ;;  %p791_p4 = scmp.lt.s32.totalorder %s35_s10, %s35_s10 }
   0xa   :  { %p787_p3 = scmp.ne.s32.totalorder %s35_s10, %s786_s18  ;;  %p792_p5 = scmp.lt.s32.totalorder %s786_s18, %s786_s18 }
   0xc   :  { %p793_p6 = por %p792_p5, %p791_p4 }
   0xe   :  { %p794_p7 = pnand %p793_p6, %p787_p3 }
  0x10   :  { %797 = shalt.err (!%p794_p7)
}
  0x11   :  { %s893_s19 = smov 64   ;;  %s894_s20 = smov 4  }
  0x12   :  { %40 = dma.hbm_to_vmem [thread:$0]  %s1075_s1, 1280, %s35_s10, [#allocation5], %s893_s19, %s893_s19, %s894_s20  }
  0x13   :  { %s895_s23 = smov [#allocation7]   ;;  %s896_s25 = smov [#allocation2]  }
  0x14   :  { %s62_s24 = sshll.u32 %s895_s23, 4  ;;  %s22_s26 = sshll.u32 %s896_s25, 4  ;;  %s63_s24 = int_to_ptr.vmem [resolvable:$true] %s62_s24  ;;  %s23_s26 = int_to_ptr.vmem [resolvable:$true] %s22_s26 }
  0x15   :  { %s798_s29 = scalar_lea.hbm %s1079_s5, 1024 }
  0x16   :  { %p799_p8 = scmp.ne.s32.totalorder %s1079_s5, %s798_s29  ;;  %p802_p9 = scmp.lt.u32.totalorder %s798_s29, %s1079_s5 }
  0x18   :  { %p804_p10 = pnand %p802_p9, %p799_p8 }
  0x1a   :  { %807 = shalt.err (!%p804_p10)
}
  0x1b   :  { %s808_s1 = scalar_lea.vmem %s63_s24, 1024  ;;  %p813_p12 = scmp.lt.s32.totalorder %s63_s24, %s63_s24 }
  0x1c   :  { %p809_p11 = scmp.ne.s32.totalorder %s63_s24, %s808_s1  ;;  %p814_p13 = scmp.lt.s32.totalorder %s808_s1, %s808_s1 }
  0x1e   :  { %p815_p0 = por %p814_p13, %p813_p12 }
  0x20   :  { %p816_p1 = pnand %p815_p0, %p809_p11 }
  0x22   :  { %819 = shalt.err (!%p816_p1)
}
  0x23   :  { %68 = dma.hbm_to_vmem [thread:$0]  %s1079_s5, 1024, %s63_s24, [#allocation8], %s893_s19, %s893_s19, %s894_s20  }
  0x24   :  { %s820_s17 = scalar_lea.hbm %s1074_s0, 256 }
  0x25   :  { %p821_p2 = scmp.ne.s32.totalorder %s1074_s0, %s820_s17  ;;  %p824_p3 = scmp.lt.u32.totalorder %s820_s17, %s1074_s0 }
  0x27   :  { %p826_p4 = pnand %p824_p3, %p821_p2 }
  0x29   :  { %829 = shalt.err (!%p826_p4)
}
  0x2a   :  { %s830_s25 = scalar_lea.vmem %s23_s26, 256  ;;  %p835_p6 = scmp.lt.s32.totalorder %s23_s26, %s23_s26 }
  0x2b   :  { %p831_p5 = scmp.ne.s32.totalorder %s23_s26, %s830_s25  ;;  %p836_p7 = scmp.lt.s32.totalorder %s830_s25, %s830_s25 }
  0x2d   :  { %p837_p8 = por %p836_p7, %p835_p6 }
  0x2f   :  { %p838_p9 = pnand %p837_p8, %p831_p5 }
  0x31   :  { %841 = shalt.err (!%p838_p9)
}
  0x32   :  { %s897_s5 = smov 128   ;;  %s898_s24 = smov 8  }
  0x33   :  { %28 = dma.hbm_to_vmem [thread:$0]  %s1074_s0, 256, %s23_s26, [#allocation3], %s897_s5, %s897_s5, %s898_s24  }
  0x34   :  { %s899_s29 = smov [#allocation6]   ;;  %s900_s11 = smov [#allocation9]  }
  0x35   :  { %s48_s30 = sshll.u32 %s899_s29, 4  ;;  %s76_s12 = sshll.u32 %s900_s11, 4  ;;  %s49_s30 = int_to_ptr.vmem [resolvable:$true] %s48_s30  ;;  %s77_s12 = int_to_ptr.vmem [resolvable:$true] %s76_s12 }
  0x36   :  { %s842_s10 = scalar_lea.hbm %s1077_s3, 1024 }
  0x37   :  { %p843_p10 = scmp.ne.s32.totalorder %s1077_s3, %s842_s10  ;;  %p846_p11 = scmp.lt.u32.totalorder %s842_s10, %s1077_s3 }
  0x39   :  { %p848_p12 = pnand %p846_p11, %p843_p10 }
  0x3b   :  { %851 = shalt.err (!%p848_p12)
}
  0x3c   :  { %s852_s0 = scalar_lea.vmem %s49_s30, 1024  ;;  %p857_p0 = scmp.lt.s32.totalorder %s49_s30, %s49_s30 }
  0x3d   :  { %p853_p13 = scmp.ne.s32.totalorder %s49_s30, %s852_s0  ;;  %p858_p1 = scmp.lt.s32.totalorder %s852_s0, %s852_s0 }
  0x3f   :  { %p859_p2 = por %p858_p1, %p857_p0 }
  0x41   :  { %p860_p3 = pnand %p859_p2, %p853_p13 }
  0x43   :  { %863 = shalt.err (!%p860_p3)
}
  0x44   :  { %54 = dma.hbm_to_vmem [thread:$0]  %s1077_s3, 1024, %s49_s30, [#allocation5], %s893_s19, %s893_s19, %s894_s20  }
  0x45   :  { %s864_s23 = scalar_lea.hbm %s1081_s7, 1024 }
  0x46   :  { %p865_p4 = scmp.ne.s32.totalorder %s1081_s7, %s864_s23  ;;  %p868_p5 = scmp.lt.u32.totalorder %s864_s23, %s1081_s7 }
  0x48   :  { %p870_p6 = pnand %p868_p5, %p865_p4 }
  0x4a   :  { %873 = shalt.err (!%p870_p6)
}
  0x4b   :  { %s874_s28 = scalar_lea.vmem %s77_s12, 1024  ;;  %p879_p8 = scmp.lt.s32.totalorder %s77_s12, %s77_s12 }
  0x4c   :  { %p875_p7 = scmp.ne.s32.totalorder %s77_s12, %s874_s28  ;;  %p880_p9 = scmp.lt.s32.totalorder %s874_s28, %s874_s28 }
  0x4e   :  { %p881_p10 = por %p880_p9, %p879_p8 }
  0x50   :  { %p882_p11 = pnand %p881_p10, %p875_p7 }
  0x52   :  { %885 = shalt.err (!%p882_p11)
}
  0x53   :  { %82 = dma.hbm_to_vmem [thread:$0]  %s1081_s7, 1024, %s77_s12, [#allocation8], %s893_s19, %s893_s19, %s894_s20  }
  0x54   :  { %886 = dma.done.wait [#allocation3], 256  }
  0x55   :  { %887 = vsyncadd [#allocation3], 4294967040 }
  0x56   :  { %888 = dma.done.wait [#allocation5], 2304  }
  0x57   :  { %889 = vsyncadd [#allocation5], 4294964992 }
  0x58   :  { %890 = dma.done.wait [#allocation8], 2048  }
  0x59   :  { %891 = vsyncadd [#allocation8], 4294965248  ;;  %v901_v0 = vmov 0   ;;  %v902_v1 = vmov 0.0   ;;  %v739_v2 = vld [vmem:[#allocation4] sm:$0xff]   ;;  %v740_v3 = vld [vmem:[#allocation4 + $0x8] sm:$0xff]  }
  0x5a   :  { %203 = vmatprep.subr.bf16.mxu0 %v901_v0  ;;  %667 = vmatprep.subr.bf16.mxu1 %v902_v1  ;;  %v741_v4 = vld [vmem:[#allocation4 + $0x10] sm:$0xff]   ;;  %v742_v5 = vld [vmem:[#allocation4 + $0x18] sm:$0xff]   ;;  %vm199_vm0 = vcmask 261120   ;;  %v743_v8 = vld [vmem:[#allocation4 + $0x20] sm:$0xff]   ;;  %vm903_vm1 = vmmov 0   ;;  %vm589_vm2 = vcmask 31744  }
  0x5b   :  { %204 = vmatpush1.bf16.msra.mxu0 %v739_v2  ;;  %v751_v6 = vld [vmem:[#allocation2 + $0x4] ss:$8 sps:$4 sm:$0xff]   ;;  %v744_v10 = vld [vmem:[#allocation4 + $0x28] sm:$0xff]   ;;  %v754_v11 = vld [vmem:[#allocation6 + $0x10] sm:$0xff]   ;;  %683 = vmatprep.mubr.msk.bf16.mxu1 %vm903_vm1, %v902_v1 }
  0x5c   :  { %205 = vmatprep.subr.bf16.mxu0 %v901_v0  ;;  %v752_v7 = vld [vmem:[#allocation6] sm:$0xff]   ;;  %612 = vmatprep.mubr.msk.bf16.mxu0 %vm199_vm0, %v751_v6  ;;  %v753_v9 = vld [vmem:[#allocation6 + $0x8] sm:$0xff]   ;;  %v755_v13 = vld [vmem:[#allocation6 + $0x18] sm:$0xff]  }
  0x5d   :  { %668 = vmatpush3.bf16.msra.mxu1 %v752_v7  ;;  %v745_v12 = vld [vmem:[#allocation4 + $0x30] sm:$0xff]   ;;  %v746_v14 = vld [vmem:[#allocation4 + $0x38] sm:$0xff]   ;;  %v747_v16 = vld [vmem:[#allocation4 + $0x40] sm:$0xff]  }
  0x5e   :  { %669 = vmatprep.subr.bf16.mxu1 %v902_v1  ;;  %v756_v15 = vld [vmem:[#allocation6 + $0x20] sm:$0xff]   ;;  %v757_v17 = vld [vmem:[#allocation6 + $0x28] sm:$0xff]   ;;  %v748_v18 = vld [vmem:[#allocation4 + $0x48] sm:$0xff]  }
  0x5f   :  { %206 = vmatpush1.bf16.msra.mxu0 %v740_v3  ;;  %v749_v19 = vld [vmem:[#allocation2] ss:$8 sps:$4 sm:$0xff]   ;;  %v758_v20 = vld [vmem:[#allocation6 + $0x30] sm:$0xff]   ;;  %v759_v21 = vld [vmem:[#allocation6 + $0x38] sm:$0xff]  }
  0x60   :  { %207 = vmatprep.subr.bf16.mxu0 %v901_v0  ;;  %v599_v22 = vld [vmem:[%s1076_s2] ss:$0 sm:$0xff]  ;;  %v760_v31 = vld [vmem:[#allocation7] sm:$0xff]   ;;  %v761_v33 = vld [vmem:[#allocation7 + $0x8] sm:$0xff]  }
  0x61   :  { %670 = vmatpush3.bf16.msra.mxu1 %v753_v9  ;;  %v762_v34 = vld [vmem:[#allocation7 + $0x10] sm:$0xff]   ;;  %v763_v35 = vld [vmem:[#allocation7 + $0x18] sm:$0xff]   ;;  %v764_v36 = vld [vmem:[#allocation7 + $0x20] sm:$0xff]  }
  0x62   :  { %671 = vmatprep.subr.bf16.mxu1 %v902_v1  ;;  %v765_v37 = vld [vmem:[#allocation7 + $0x28] sm:$0xff]   ;;  %v766_v38 = vld [vmem:[#allocation7 + $0x30] sm:$0xff]   ;;  %v767_v39 = vld [vmem:[#allocation7 + $0x38] sm:$0xff]  }
  0x63   :  { %208 = vmatpush1.bf16.msra.mxu0 %v741_v4  ;;  %v768_v40 = vld [vmem:[#allocation9] sm:$0xff]   ;;  %v769_v41 = vld [vmem:[#allocation9 + $0x8] sm:$0xff]   ;;  %v770_v42 = vld [vmem:[#allocation9 + $0x10] sm:$0xff]  }
  0x64   :  { %209 = vmatprep.subr.bf16.mxu0 %v901_v0  ;;  %v771_v43 = vld [vmem:[#allocation9 + $0x18] sm:$0xff]   ;;  %v772_v44 = vld [vmem:[#allocation9 + $0x20] sm:$0xff]   ;;  %v773_v45 = vld [vmem:[#allocation9 + $0x28] sm:$0xff]  }
  0x65   :  { %672 = vmatpush3.bf16.msra.mxu1 %v754_v11  ;;  %v613_v46 = vld [vmem:[%s1078_s4] ss:$0 sm:$0xff]  ;;  %v775_v57 = vld [vmem:[#allocation9 + $0x38] sm:$0xff]  }
  0x66   :  { %673 = vmatprep.subr.bf16.mxu1 %v902_v1  ;;  %v774_v56 = vld [vmem:[#allocation9 + $0x30] sm:$0xff]  }
  0x67   :  { %210 = vmatpush1.bf16.msra.mxu0 %v742_v5  ;;  %v622_v58 = vld [vmem:[%s1080_s6] ss:$0 sm:$0xff] }
  0x68   :  { %211 = vmatprep.subr.bf16.mxu0 %v901_v0 }
  0x69   :  { %674 = vmatpush3.bf16.msra.mxu1 %v755_v13 }
  0x6a   :  { %675 = vmatprep.subr.bf16.mxu1 %v902_v1 }
  0x6b   :  { %212 = vmatpush1.bf16.msra.mxu0 %v743_v8 }
  0x6c   :  { %213 = vmatprep.subr.bf16.mxu0 %v901_v0 }
  0x6d   :  { %676 = vmatpush3.bf16.msra.mxu1 %v756_v15 }
  0x6e   :  { %677 = vmatprep.subr.bf16.mxu1 %v902_v1 }
  0x6f   :  { %214 = vmatpush1.bf16.msra.mxu0 %v744_v10 }
  0x70   :  { %215 = vmatprep.subr.bf16.mxu0 %v901_v0 }
  0x71   :  { %678 = vmatpush3.bf16.msra.mxu1 %v757_v17 }
  0x72   :  { %679 = vmatprep.subr.bf16.mxu1 %v902_v1 }
  0x73   :  { %216 = vmatpush1.bf16.msra.mxu0 %v745_v12 }
  0x74   :  { %217 = vmatprep.subr.bf16.mxu0 %v901_v0 }
  0x75   :  { %680 = vmatpush3.bf16.msra.mxu1 %v758_v20 }
  0x76   :  { %681 = vmatprep.subr.bf16.mxu1 %v902_v1 }
  0x77   :  { %218 = vmatpush1.bf16.msra.mxu0 %v746_v14 }
  0x78   :  { %219 = vmatprep.subr.bf16.mxu0 %v901_v0 }
  0x79   :  { %682 = vmatpush3.bf16.msra.mxu1 %v759_v21 }
  0x7a   :  { %687 = vmatprep.subr.bf16.mxu1 %v902_v1 }
  0x7b   :  { %220 = vmatpush1.bf16.msra.mxu0 %v747_v16 }
  0x7c   :  { %221 = vmatprep.subr.bf16.mxu0 %v901_v0 }
  0x7f   :  { %222 = vmatpush1.bf16.msra.mxu0 %v748_v18 }
  0x80   :  { %707 = vmatprep.subr.bf16.mxu0 %v902_v1 }
  0x82   :  { %236 = vmatmul.mubr.bf16.vlgmr.msra.gmra.mrb[0].mxu0 %v749_v19 }
  0x83   :  { %723 = vmatprep.mubr.msk.bf16.mxu0 %vm903_vm1, %v902_v1  ;;  %708 = vmatpush3.bf16.msra.mxu0 %v768_v40 }
  0x84   :  { %709 = vmatprep.subr.bf16.mxu0 %v902_v1 }
  0x87   :  { %710 = vmatpush3.bf16.msra.mxu0 %v769_v41 }
  0x88   :  { %711 = vmatprep.subr.bf16.mxu0 %v902_v1 }
  0x8b   :  { %712 = vmatpush3.bf16.msra.mxu0 %v770_v42 }
  0x8c   :  { %713 = vmatprep.subr.bf16.mxu0 %v902_v1 }
  0x8f   :  { %714 = vmatpush3.bf16.msra.mxu0 %v771_v43 }
  0x90   :  { %715 = vmatprep.subr.bf16.mxu0 %v902_v1 }
  0x93   :  { %716 = vmatpush3.bf16.msra.mxu0 %v772_v44 }
  0x94   :  { %717 = vmatprep.subr.bf16.mxu0 %v902_v1 }
  0x97   :  { %718 = vmatpush3.bf16.msra.mxu0 %v773_v45 }
  0x98   :  { %719 = vmatprep.subr.bf16.mxu0 %v902_v1 }
  0x9b   :  { %720 = vmatpush3.bf16.msra.mxu0 %v774_v56 }
  0x9c   :  { %721 = vmatprep.subr.bf16.mxu0 %v902_v1 }
  0x9f   :  { %722 = vmatpush3.bf16.msra.mxu0 %v775_v57 }
 0x155   :  { %v237_v23 = vpop.f32.mrb[0].mxu0 }
 0x156   :  { %v238_v24 = vadd.f32 %v599_v22, %v237_v23  ;;  %v239_v25 = vpop.f32.mrb[1].mxu0 }
 0x157   :  { %v240_v26 = vpop.f32.mrb[2].mxu0 }
 0x158   :  { %v241_v27 = vadd.f32 %v599_v22, %v240_v26  ;;  %v242_v28 = vpop.f32.mrb[3].mxu0  ;;  %v244_v29 = vmax.f32 %v238_v24, 0.0 }
 0x15a   :  { %v245_v30 = vmax.f32 %v241_v27, 0.0 }
 0x15c   :  { %v246_v32 = vpack.c.bf16 %v245_v30, %v244_v29 }
 0x15e   :  { %684 = vmatmul.mubr.bf16.vlgmr.msra.gmra.mrb[0].mxu1 %v246_v32 }
 0x15f   :  { %688 = vmatpush3.bf16.msra.mxu1 %v760_v31  ;;  %703 = vmatprep.mubr.msk.bf16.mxu1 %vm903_vm1, %v902_v1 }
 0x160   :  { %689 = vmatprep.subr.bf16.mxu1 %v902_v1 }
 0x163   :  { %690 = vmatpush3.bf16.msra.mxu1 %v761_v33 }
 0x164   :  { %691 = vmatprep.subr.bf16.mxu1 %v902_v1 }
 0x167   :  { %692 = vmatpush3.bf16.msra.mxu1 %v762_v34 }
 0x168   :  { %693 = vmatprep.subr.bf16.mxu1 %v902_v1 }
 0x16b   :  { %694 = vmatpush3.bf16.msra.mxu1 %v763_v35 }
 0x16c   :  { %695 = vmatprep.subr.bf16.mxu1 %v902_v1 }
 0x16f   :  { %696 = vmatpush3.bf16.msra.mxu1 %v764_v36 }
 0x170   :  { %697 = vmatprep.subr.bf16.mxu1 %v902_v1 }
 0x173   :  { %698 = vmatpush3.bf16.msra.mxu1 %v765_v37 }
 0x174   :  { %699 = vmatprep.subr.bf16.mxu1 %v902_v1 }
 0x177   :  { %700 = vmatpush3.bf16.msra.mxu1 %v766_v38 }
 0x178   :  { %701 = vmatprep.subr.bf16.mxu1 %v902_v1  ;;  %v631_v1 = vld [vmem:[%s1082_s8] ss:$0 sm:$0xff] }
 0x17b   :  { %702 = vmatpush3.bf16.msra.mxu1 %v767_v39 }
 0x231   :  { %v352_v47 = vpop.f32.mrb[0].mxu1 }
 0x232   :  { %v353_v48 = vadd.f32 %v613_v46, %v352_v47  ;;  %v685_v49 = vpop.f32.mrb[1].mxu1 }
 0x233   :  { %v355_v50 = vpop.f32.mrb[2].mxu1 }
 0x234   :  { %v356_v51 = vadd.f32 %v613_v46, %v355_v50  ;;  %v686_v52 = vpop.f32.mrb[3].mxu1  ;;  %v359_v53 = vmax.f32 %v353_v48, 0.0 }
 0x236   :  { %v360_v54 = vmax.f32 %v356_v51, 0.0 }
 0x238   :  { %v361_v55 = vpack.c.bf16 %v360_v54, %v359_v53 }
 0x23a   :  { %704 = vmatmul.mubr.bf16.vlgmr.msra.gmra.mrb[4].mxu1 %v361_v55 }
 0x30d   :  { %v467_v59 = vpop.f32.mrb[4].mxu1 }
 0x30e   :  { %v468_v60 = vadd.f32 %v622_v58, %v467_v59  ;;  %v705_v61 = vpop.f32.mrb[5].mxu1 }
 0x30f   :  { %v470_v62 = vpop.f32.mrb[6].mxu1 }
 0x310   :  { %v471_v63 = vadd.f32 %v622_v58, %v470_v62  ;;  %v706_v0 = vpop.f32.mrb[7].mxu1  ;;  %v474_v2 = vmax.f32 %v468_v60, 0.0 }
 0x312   :  { %v475_v3 = vmax.f32 %v471_v63, 0.0 }
 0x314   :  { %v476_v4 = vpack.c.bf16 %v475_v3, %v474_v2 }
 0x316   :  { %724 = vmatmul.mubr.bf16.vlgmr.msra.gmra.mrb[4].mxu0 %v476_v4 }
 0x3e9   :  { %v582_v5 = vpop.f32.mrb[4].mxu0 }
 0x3ea   :  { %v583_v6 = vadd.f32 %v631_v1, %v582_v5  ;;  %v725_v7 = vpop.f32.mrb[5].mxu0 }
 0x3eb   :  { %v585_v8 = vpop.f32.mrb[6].mxu0 }
 0x3ec   :  { %590 = vst.msk [vmem:[%s1083_s9] sm:$0xff] %vm589_vm2, %v583_v6  ;;  %v586_v9 = vadd.f32 %v631_v1, %v585_v8  ;;  %v726_v10 = vpop.f32.mrb[7].mxu0 }
 0x3ee   :  { %591 = vst.msk [vmem:[%s1083_s9 + $0x8] sm:$0xff] %vm589_vm2, %v586_v9 }
 0x3ef   :  { %596 = vsyncpa [#allocation3], 1 }
 0x3f0   :  { %597 = vsyncpa [#allocation5], 1 }
 0x3f1   :  { %598 = vsyncpa [#allocation8], 1 }

</bundles_post_ra>
